<compile_context>
chip_gen: v5e
topology: v5e:2x2
jax: 0.10.0
libtpu: 0.0.40
codegen_flags: <defaults>
</compile_context>

<pallas_src>
import functools

import numpy as np
import jax
import jax.numpy as jnp
from jax.experimental import pallas as pl
from jax.experimental.pallas import tpu as pltpu


def _round_up(x, m):
    return ((x + m - 1) // m) * m


# ---------------------------------------------------------------------------
# Fused whole-network kernel: signed-split first matmul, chained (matmul+ReLU)
# for the remaining groups, log_softmax epilogue.  Everything lives in VMEM.
# ---------------------------------------------------------------------------
def fused_net_kernel(x_ref, wp0_ref, wn0_ref, *rest, num_classes):
    w_refs, o_ref = rest[:-1], rest[-1]

    x = x_ref[...]                                   # (Mp, K0p), may be signed
    wp0 = wp0_ref[...]
    wn0 = wn0_ref[...]
    h = jnp.dot(jnp.maximum(x, 0.0).astype(wp0.dtype), wp0,
                preferred_element_type=jnp.float32)
    h = h + jnp.dot(jnp.maximum(-x, 0.0).astype(wn0.dtype), wn0,
                    preferred_element_type=jnp.float32)
    h = jnp.maximum(h, 0.0)                          # ReLU after group 0

    for w_ref in w_refs:                             # groups 1..G-1 (input >= 0)
        w = w_ref[...]
        h = jnp.dot(h.astype(w.dtype), w, preferred_element_type=jnp.float32)
        h = jnp.maximum(h, 0.0)                      # module applies ReLU to every layer

    # Fused log_softmax over the first `num_classes` columns (rest is lane padding).
    col = jax.lax.broadcasted_iota(jnp.int32, h.shape, 1)
    xm = jnp.where(col < num_classes, h, -jnp.inf)   # mask BEFORE exp
    m = jnp.max(xm, axis=-1, keepdims=True)
    lse = jnp.log(jnp.sum(jnp.exp(xm - m), axis=-1, keepdims=True))
    o_ref[...] = (h - m - lse).astype(o_ref.dtype)   # padded cols: finite garbage, sliced off


# ---------------------------------------------------------------------------
# Parameter construction: mirrors FCBinaryGadgetNet.__init__ / initialize_weights.
# Returns raw (weight (out,in), scores (out,in)) numpy pairs per layer.
# ---------------------------------------------------------------------------
def build_raw_params(d, l, prec, key):
    dims = [(784, 784 * 2 * prec), (784 * 2 * prec, 784 * 2 * prec)]
    dims.append((784 * 2 * prec, 10 if l == 1 else d))
    for i in range(l - 1):
        dims.append((d, 2 * prec * d))
        dims.append((2 * prec * d, 2 * prec * d))
        dims.append((2 * prec * d, 10 if i == l - 2 else d))

    params = []
    for layer_id, (in_f, out_f) in enumerate(dims):
        if layer_id % 3 == 0:
            # gadget layer: each row has a single +/-1 at column idx // (2*prec)
            w = np.zeros((out_f, in_f), np.float32)
            idx = np.arange(out_f)
            w[idx, idx // (2 * prec)] = np.where(idx % (2 * prec) < prec, 1.0, -1.0)
            s = np.ones((out_f, in_f), np.float32)
        elif layer_id % 3 == 1:
            # diagonal layer: weight[idx, idx] = 2 ** -(idx % prec)
            w = np.zeros((out_f, in_f), np.float32)
            idx = np.arange(out_f)
            w[idx, idx] = 2.0 ** (-(idx % prec))
            s = np.ones((out_f, in_f), np.float32)
        else:
            # trainable-mask layer: ones on first half of columns; scores ~ U[0,1) ('hc').
            w = np.zeros((out_f, in_f), np.float32)
            w[:, : in_f // 2] = 1.0
            key, sub = jax.random.split(key)
            s = np.asarray(jax.random.uniform(sub, (out_f, in_f), dtype=jnp.float32))
        params.append((w, s))
    return params


# ---------------------------------------------------------------------------
# Offline fold (numpy, runs once outside jit): per group of 3 layers build
#   Wp[o,i] = sum_{j: src_j=i, sign_j>0} C_eff[o,j] * d_j * |A[j,src_j]|
#   Wn[o,i] = sum_{j: src_j=i, sign_j<0} C_eff[o,j] * d_j * |A[j,src_j]|
# pre-transposed to (in, out), zero-padded to (8,128)-aligned tiles.
# ---------------------------------------------------------------------------
def fold_params(raw_params, *, weight_dtype=jnp.float32):
    assert len(raw_params) % 3 == 0, "FCBinaryGadgetNet always has 3*l layers"
    num_groups = len(raw_params) // 3

    folded = []
    for g in range(num_groups):
        (wA, sA), (wB, sB), (wC, sC) = raw_params[3 * g: 3 * g + 3]
        A = wA * np.clip(sA, 0.0, 1.0)                       # gadget (mid, in)
        Bm = wB * np.clip(sB, 0.0, 1.0)                      # diagonal (mid, mid)
        C = (wC * np.clip(sC, 0.0, 1.0)).astype(np.float32)  # mask (out, mid)
        mid, in_f = A.shape
        out_f = C.shape[0]

        # Structural guards -- hold by construction of FCBinaryGadgetNet.
        assert np.all(np.count_nonzero(A, axis=1) <= 1), "gadget row must have <=1 nonzero"
        assert np.count_nonzero(Bm - np.diag(np.diagonal(Bm))) == 0, "layer%3==1 must be diagonal"

        d_eff = np.maximum(np.diagonal(Bm), 0.0)             # relu(d*y) = max(d,0)*y for y>=0
        src = np.abs(A).argmax(axis=1)                       # column of the single nonzero
        sgn = A[np.arange(mid), src]                         # its signed value

        contrib = C * (d_eff * np.abs(sgn))[None, :]         # (out, mid)
        Wp = np.zeros((in_f, out_f), np.float32)             # already transposed: (in, out)
        Wn = np.zeros((in_f, out_f), np.float32)
        pos, neg = sgn > 0, sgn < 0
        np.add.at(Wp, src[pos], contrib[:, pos].T)
        np.add.at(Wn, src[neg], contrib[:, neg].T)

        kp, np_out = _round_up(in_f, 128), _round_up(out_f, 128)
        wp_pad = np.zeros((kp, np_out), np.float32)
        wp_pad[:in_f, :out_f] = Wp
        if g == 0:
            wn_pad = np.zeros((kp, np_out), np.float32)
            wn_pad[:in_f, :out_f] = Wn
            folded += [jnp.asarray(wp_pad, dtype=weight_dtype),
                       jnp.asarray(wn_pad, dtype=weight_dtype)]
        else:
            # Input to groups >= 1 is post-ReLU (>= 0): relu(-x) == 0, drop Wn entirely.
            folded.append(jnp.asarray(wp_pad, dtype=weight_dtype))
    return folded


# ---------------------------------------------------------------------------
# Forward pass: one pallas_call for the whole network.
# ---------------------------------------------------------------------------
def fc_binary_gadget_forward(x, folded_weights, num_classes=10):
    B = x.shape[0]
    h = x.reshape(B, -1).astype(jnp.float32)                 # (B, 784)
    k_in = h.shape[1]
    k0p = folded_weights[0].shape[0]
    mp = _round_up(max(B, 1), 8)
    h = jnp.pad(h, ((0, mp - B), (0, k0p - k_in)))           # only runtime pad: tiny (Mp, K0p)

    # TODO(synk): for configs where folded weights exceed VMEM (very large d),
    # fall back to per-layer N-tiled pallas_calls instead of this fused kernel.
    total_bytes = sum(int(np.prod(w.shape)) * w.dtype.itemsize for w in folded_weights)
    assert total_bytes < 24 * 1024 * 1024, "folded weights too large for fused VMEM kernel"

    np_final = folded_weights[-1].shape[1]
    kernel = functools.partial(fused_net_kernel, num_classes=num_classes)
    in_specs = [pl.BlockSpec(h.shape, lambda i: (0, 0))]
    in_specs += [pl.BlockSpec(w.shape, lambda i: (0, 0)) for w in folded_weights]

    logp = pl.pallas_call(
        kernel,
        out_shape=jax.ShapeDtypeStruct((mp, np_final), jnp.float32),
        grid=(1,),
        in_specs=in_specs,
        out_specs=pl.BlockSpec((mp, np_final), lambda i: (0, 0)),
        compiler_params=pltpu.CompilerParams(dimension_semantics=("arbitrary",)),
    )(h, *folded_weights)
    return logp[:B, :num_classes]


if __name__ == "__main__":
    # Small-but-consistent configuration: 784 input is fixed by the module,
    # d / l / prec shrunk from the (50, 5, 4) defaults.
    d, l, prec = 16, 2, 2
    key = jax.random.PRNGKey(0)
    k_x, k_p = jax.random.split(key)

    x = jax.random.normal(k_x, (2, 1, 28, 28), dtype=jnp.float32)   # NCHW, MNIST-like
    raw_params = build_raw_params(d, l, prec, k_p)
    folded = fold_params(raw_params)            # offline: mask folded, transposed, padded

    fwd = jax.jit(fc_binary_gadget_forward)
    logp = jax.block_until_ready(fwd(x, folded))

    # Faithful dense reference (unfolded layers, exactly as the PyTorch module computes).
    def ref_forward(x, params):
        out = x.reshape(x.shape[0], 784).astype(jnp.float32)
        for w, s in params:
            w_eff = jnp.asarray(w) * jnp.clip(jnp.asarray(s), 0.0, 1.0)
            out = jnp.maximum(out @ w_eff.T, 0.0)
        return jax.nn.log_softmax(out, axis=1)

    ref = ref_forward(x, raw_params)
    assert logp.shape == (2, 10)
    assert np.all(np.isfinite(np.asarray(logp)))
    probs = np.exp(np.asarray(logp))
    ref_probs = np.exp(np.asarray(ref))
    np.testing.assert_allclose(probs.sum(axis=1), np.ones(2), atol=1e-3)
    np.testing.assert_allclose(probs, ref_probs, atol=1e-2)

    print("KERNEL_OK")
</pallas_src>

<mosaic_0001>
module attributes {stable_mosaic.version = 11 : i64} {
  func.func @fused_net_kernel(%arg0: i32, %arg1: memref<8x896xf32, #tpu.memory_space<vmem>>, %arg2: memref<896x128xf32, #tpu.memory_space<vmem>>, %arg3: memref<896x128xf32, #tpu.memory_space<vmem>>, %arg4: memref<128x128xf32, #tpu.memory_space<vmem>>, %arg5: memref<8x128xf32, #tpu.memory_space<vmem>>) attributes {dimension_semantics = [#tpu.dimension_semantics<arbitrary>], iteration_bounds = array<i64: 1>, scalar_prefetch = 0 : i64, scratch_operands = 0 : i64, tpu.core_type = #tpu.core_type<tc>, window_params = [{pipeline_mode = #tpu.pipeline_mode<synchronous>, transform_indices = @transform_0, window_bounds = array<i64: 8, 896>}, {pipeline_mode = #tpu.pipeline_mode<synchronous>, transform_indices = @transform_1, window_bounds = array<i64: 896, 128>}, {pipeline_mode = #tpu.pipeline_mode<synchronous>, transform_indices = @transform_2, window_bounds = array<i64: 896, 128>}, {pipeline_mode = #tpu.pipeline_mode<synchronous>, transform_indices = @transform_3, window_bounds = array<i64: 128, 128>}, {pipeline_mode = #tpu.pipeline_mode<synchronous>, transform_indices = @transform_4, window_bounds = array<i64: 8, 128>}]} {
    %c0 = arith.constant 0 : index
    %c0_0 = arith.constant 0 : index
    %0 = vector.load %arg1[%c0, %c0_0] : memref<8x896xf32, #tpu.memory_space<vmem>>, vector<8x896xf32>
    %c0_1 = arith.constant 0 : index
    %c0_2 = arith.constant 0 : index
    %1 = vector.load %arg2[%c0_1, %c0_2] : memref<896x128xf32, #tpu.memory_space<vmem>>, vector<896x128xf32>
    %c0_3 = arith.constant 0 : index
    %c0_4 = arith.constant 0 : index
    %2 = vector.load %arg3[%c0_3, %c0_4] : memref<896x128xf32, #tpu.memory_space<vmem>>, vector<896x128xf32>
    %cst = arith.constant 0.000000e+00 : f32
    %3 = vector.broadcast %cst : f32 to vector<8x896xf32>
    %4 = arith.maximumf %0, %3 : vector<8x896xf32>
    %cst_5 = arith.constant dense<0.000000e+00> : vector<8x128xf32>
    %5 = tpu.matmul %4, %1, %cst_5 {dimension_numbers = #tpu.dot_dimension_numbers<[1], [0], [0], [1], [0, 0, 1, 1], [], []>} : vector<8x896xf32>, vector<896x128xf32>, vector<8x128xf32> -> vector<8x128xf32>
    %cst_6 = arith.constant 0.000000e+00 : f32
    %6 = vector.broadcast %cst_6 : f32 to vector<8x896xf32>
    %7 = arith.subf %6, %0 : vector<8x896xf32>
    %cst_7 = arith.constant 0.000000e+00 : f32
    %8 = vector.broadcast %cst_7 : f32 to vector<8x896xf32>
    %9 = arith.maximumf %7, %8 : vector<8x896xf32>
    %cst_8 = arith.constant dense<0.000000e+00> : vector<8x128xf32>
    %10 = tpu.matmul %9, %2, %cst_8 {dimension_numbers = #tpu.dot_dimension_numbers<[1], [0], [0], [1], [0, 0, 1, 1], [], []>} : vector<8x896xf32>, vector<896x128xf32>, vector<8x128xf32> -> vector<8x128xf32>
    %11 = arith.addf %5, %10 : vector<8x128xf32>
    %cst_9 = arith.constant 0.000000e+00 : f32
    %12 = vector.broadcast %cst_9 : f32 to vector<8x128xf32>
    %13 = arith.maximumf %11, %12 : vector<8x128xf32>
    %c0_10 = arith.constant 0 : index
    %c0_11 = arith.constant 0 : index
    %14 = vector.load %arg4[%c0_10, %c0_11] : memref<128x128xf32, #tpu.memory_space<vmem>>, vector<128x128xf32>
    %cst_12 = arith.constant dense<0.000000e+00> : vector<8x128xf32>
    %15 = tpu.matmul %13, %14, %cst_12 {dimension_numbers = #tpu.dot_dimension_numbers<[1], [0], [0], [1], [0, 0, 1, 1], [], []>} : vector<8x128xf32>, vector<128x128xf32>, vector<8x128xf32> -> vector<8x128xf32>
    %cst_13 = arith.constant 0.000000e+00 : f32
    %16 = vector.broadcast %cst_13 : f32 to vector<8x128xf32>
    %17 = arith.maximumf %15, %16 : vector<8x128xf32>
    %18 = tpu.iota {dimensions = array<i32: 1>} : vector<8x128xi32>
    %c10_i32 = arith.constant 10 : i32
    %19 = vector.broadcast %c10_i32 : i32 to vector<8x128xi32>
    %20 = arith.cmpi slt, %18, %19 : vector<8x128xi32>
    %cst_14 = arith.constant 0xFF800000 : f32
    %21 = vector.broadcast %cst_14 : f32 to vector<8x128xf32>
    %22 = arith.select %20, %17, %21 : vector<8x128xi1>, vector<8x128xf32>
    %cst_15 = arith.constant dense<0xFF800000> : vector<8xf32>
    %23 = vector.multi_reduction <maximumf>, %22, %cst_15 [1] : vector<8x128xf32> to vector<8xf32>
    %24 = vector.shape_cast %23 : vector<8xf32> to vector<8x1xf32>
    %25 = vector.broadcast %24 : vector<8x1xf32> to vector<8x128xf32>
    %26 = arith.subf %22, %25 : vector<8x128xf32>
    %27 = math.exp %26 : vector<8x128xf32>
    %cst_16 = arith.constant dense<0.000000e+00> : vector<8xf32>
    %28 = vector.multi_reduction <add>, %27, %cst_16 [1] : vector<8x128xf32> to vector<8xf32>
    %29 = vector.shape_cast %28 : vector<8xf32> to vector<8x1xf32>
    %30 = math.log %29 : vector<8x1xf32>
    %31 = vector.broadcast %24 : vector<8x1xf32> to vector<8x128xf32>
    %32 = arith.subf %17, %31 : vector<8x128xf32>
    %33 = vector.broadcast %30 : vector<8x1xf32> to vector<8x128xf32>
    %34 = arith.subf %32, %33 : vector<8x128xf32>
    %c0_17 = arith.constant 0 : index
    %c0_18 = arith.constant 0 : index
    %35 = vector.load %arg5[%c0_17, %c0_18] : memref<8x128xf32, #tpu.memory_space<vmem>>, vector<8x128xf32>
    tpu.vector_store %arg5[%c0_17, %c0_18], %34 {strides = array<i32>} : memref<8x128xf32, #tpu.memory_space<vmem>>, vector<8x128xf32>,
    return
  }
  func.func @transform_0(%arg0: i32) -> (i32, i32) {
    %c0_i32 = arith.constant 0 : i32
    %c0_i32_0 = arith.constant 0 : i32
    %c0_i32_1 = arith.constant 0 : i32
    return %c0_i32, %c0_i32_0 : i32, i32
  }
  func.func @transform_1(%arg0: i32) -> (i32, i32) {
    %c0_i32 = arith.constant 0 : i32
    %c0_i32_0 = arith.constant 0 : i32
    %c0_i32_1 = arith.constant 0 : i32
    return %c0_i32, %c0_i32_0 : i32, i32
  }
  func.func @transform_2(%arg0: i32) -> (i32, i32) {
    %c0_i32 = arith.constant 0 : i32
    %c0_i32_0 = arith.constant 0 : i32
    %c0_i32_1 = arith.constant 0 : i32
    return %c0_i32, %c0_i32_0 : i32, i32
  }
  func.func @transform_3(%arg0: i32) -> (i32, i32) {
    %c0_i32 = arith.constant 0 : i32
    %c0_i32_0 = arith.constant 0 : i32
    %c0_i32_1 = arith.constant 0 : i32
    return %c0_i32, %c0_i32_0 : i32, i32
  }
  func.func @transform_4(%arg0: i32) -> (i32, i32) {
    %c0_i32 = arith.constant 0 : i32
    %c0_i32_0 = arith.constant 0 : i32
    %c0_i32_1 = arith.constant 0 : i32
    return %c0_i32, %c0_i32_0 : i32, i32
  }
}

</mosaic_0001>

<bundles_post_ra>
// kernel: fc_binary_gadget_forward.1
= control target key start
LH: loop header
LB: loop body
LE: loop exit
PB: predicated region body
PF: predicated region fallthrough
CT: control target
= control target key end

     0   :  { %9 = vsyncpa [#allocation3], 0  ;;  %s836_s0 = inlined_call_operand.vmem [shape: f32[8,896], index: 0, kind: input, shape index: {}]   ;;  %s837_s1 = inlined_call_operand.hbm [shape: f32[896,128], index: 1, kind: input, shape index: {}]   ;;  %s838_s2 = inlined_call_operand.hbm [shape: f32[896,128], index: 2, kind: input, shape index: {}]   ;;  %s839_s3 = inlined_call_operand.vmem [shape: f32[128,128], index: 3, kind: input, shape index: {}]   ;;  %s840_s4 = inlined_call_operand.vmem [shape: f32[8,128], index: 4, kind: output, shape index: {}]  }
   0x1   :  { %s17_s17 = sshll.u32 %s837_s1, 4  ;;  %s18_s17 = int_to_ptr.hbm [resolvable:$true] %s17_s17 }
   0x2   :  { %10 = vsyncpa [#allocation5], 0  ;;  %s701_s18 = smov [#allocation2]   ;;  %s30_s22 = sshll.u32 %s838_s2, 4  ;;  %s31_s22 = int_to_ptr.hbm [resolvable:$true] %s30_s22 }
   0x3   :  { %s19_s19 = sshll.u32 %s701_s18, 4  ;;  %s702_s23 = smov 128   ;;  %s20_s19 = int_to_ptr.vmem [resolvable:$true] %s19_s19 }
   0x4   :  { %s703_s24 = smov 8   ;;  %s704_s25 = smov [#allocation4]  }
   0x5   :  { %25 = dma.hbm_to_vmem [thread:$0]  %s18_s17, 14336, %s20_s19, [#allocation3], %s702_s23, %s702_s23, %s703_s24  }
   0x6   :  { %s32_s26 = sshll.u32 %s704_s25, 4  ;;  %s33_s26 = int_to_ptr.vmem [resolvable:$true] %s32_s26 }
   0x7   :  { %38 = dma.hbm_to_vmem [thread:$0]  %s31_s22, 14336, %s33_s26, [#allocation5], %s702_s23, %s702_s23, %s703_s24  }
   0x8   :  { %697 = dma.done.wait [#allocation3], 14336  }
   0x9   :  { %698 = vsyncadd [#allocation3], 4294952960 }
   0xa   :  { %699 = dma.done.wait [#allocation5], 14336  }
   0xb   :  { %700 = vsyncadd [#allocation5], 4294952960  ;;  %v183_v0 = vld [vmem:[#allocation4 + $0x78] sm:$0xff]  ;;  %v182_v2 = vld [vmem:[#allocation4 + $0x70] sm:$0xff] }
   0xc   :  { %v215_v1 = vld [vmem:[#allocation4 + $0x178] sm:$0xff]  ;;  %301 = vmatpush.msra.mxu0 %v183_v0  ;;  %v214_v4 = vld [vmem:[#allocation4 + $0x170] sm:$0xff]  ;;  %v181_v6 = vld [vmem:[#allocation4 + $0x68] sm:$0xff] }
   0xd   :  { %341 = vmatpush.msra.mxu2 %v215_v1  ;;  %v199_v3 = vld [vmem:[#allocation4 + $0xf8] sm:$0xff]  ;;  %v198_v7 = vld [vmem:[#allocation4 + $0xf0] sm:$0xff]  ;;  %v213_v8 = vld [vmem:[#allocation4 + $0x168] sm:$0xff] }
   0xe   :  { %v231_v5 = vld [vmem:[#allocation4 + $0x1f8] sm:$0xff]  ;;  %321 = vmatpush.msra.mxu1 %v199_v3  ;;  %302 = vmatpush.msra.mxu0 %v182_v2  ;;  %v230_v9 = vld [vmem:[#allocation4 + $0x1f0] sm:$0xff]  ;;  %v197_v10 = vld [vmem:[#allocation4 + $0xe8] sm:$0xff] }
   0xf   :  { %361 = vmatpush.msra.mxu3 %v231_v5  ;;  %342 = vmatpush.msra.mxu2 %v214_v4  ;;  %v180_v11 = vld [vmem:[#allocation4 + $0x60] sm:$0xff]  ;;  %v229_v13 = vld [vmem:[#allocation4 + $0x1e8] sm:$0xff]  ;;  %v179_v16 = vld [vmem:[#allocation4 + $0x58] sm:$0xff] }
  0x10   :  { %322 = vmatpush.msra.mxu1 %v198_v7  ;;  %v212_v12 = vld [vmem:[#allocation4 + $0x160] sm:$0xff]  ;;  %303 = vmatpush.msra.mxu0 %v181_v6  ;;  %v211_v17 = vld [vmem:[#allocation4 + $0x158] sm:$0xff]  ;;  %v178_v20 = vld [vmem:[#allocation4 + $0x50] sm:$0xff] }
  0x11   :  { %362 = vmatpush.msra.mxu3 %v230_v9  ;;  %343 = vmatpush.msra.mxu2 %v213_v8  ;;  %v196_v14 = vld [vmem:[#allocation4 + $0xe0] sm:$0xff]  ;;  %v195_v18 = vld [vmem:[#allocation4 + $0xd8] sm:$0xff]  ;;  %v210_v21 = vld [vmem:[#allocation4 + $0x150] sm:$0xff] }
  0x12   :  { %v228_v15 = vld [vmem:[#allocation4 + $0x1e0] sm:$0xff]  ;;  %323 = vmatpush.msra.mxu1 %v197_v10  ;;  %304 = vmatpush.msra.mxu0 %v180_v11  ;;  %v227_v19 = vld [vmem:[#allocation4 + $0x1d8] sm:$0xff]  ;;  %v194_v22 = vld [vmem:[#allocation4 + $0xd0] sm:$0xff] }
  0x13   :  { %363 = vmatpush.msra.mxu3 %v229_v13  ;;  %344 = vmatpush.msra.mxu2 %v212_v12  ;;  %v226_v23 = vld [vmem:[#allocation4 + $0x1d0] sm:$0xff]  ;;  %v177_v24 = vld [vmem:[#allocation4 + $0x48] sm:$0xff]  ;;  %v176_v28 = vld [vmem:[#allocation4 + $0x40] sm:$0xff] }
  0x14   :  { %324 = vmatpush.msra.mxu1 %v196_v14  ;;  %305 = vmatpush.msra.mxu0 %v179_v16  ;;  %v209_v25 = vld [vmem:[#allocation4 + $0x148] sm:$0xff]  ;;  %v208_v29 = vld [vmem:[#allocation4 + $0x140] sm:$0xff]  ;;  %v175_v32 = vld [vmem:[#allocation4 + $0x38] sm:$0xff] }
  0x15   :  { %364 = vmatpush.msra.mxu3 %v228_v15  ;;  %345 = vmatpush.msra.mxu2 %v211_v17  ;;  %v193_v26 = vld [vmem:[#allocation4 + $0xc8] sm:$0xff]  ;;  %v192_v30 = vld [vmem:[#allocation4 + $0xc0] sm:$0xff]  ;;  %v207_v33 = vld [vmem:[#allocation4 + $0x138] sm:$0xff] }
  0x16   :  { %325 = vmatpush.msra.mxu1 %v195_v18  ;;  %306 = vmatpush.msra.mxu0 %v178_v20  ;;  %v225_v27 = vld [vmem:[#allocation4 + $0x1c8] sm:$0xff]  ;;  %v224_v31 = vld [vmem:[#allocation4 + $0x1c0] sm:$0xff]  ;;  %v191_v34 = vld [vmem:[#allocation4 + $0xb8] sm:$0xff] }
  0x17   :  { %365 = vmatpush.msra.mxu3 %v227_v19  ;;  %346 = vmatpush.msra.mxu2 %v210_v21  ;;  %v223_v35 = vld [vmem:[#allocation4 + $0x1b8] sm:$0xff]  ;;  %v174_v36 = vld [vmem:[#allocation4 + $0x30] sm:$0xff]  ;;  %v173_v40 = vld [vmem:[#allocation4 + $0x28] sm:$0xff] }
  0x18   :  { %326 = vmatpush.msra.mxu1 %v194_v22  ;;  %307 = vmatpush.msra.mxu0 %v177_v24  ;;  %v206_v37 = vld [vmem:[#allocation4 + $0x130] sm:$0xff]  ;;  %v205_v41 = vld [vmem:[#allocation4 + $0x128] sm:$0xff]  ;;  %v172_v44 = vld [vmem:[#allocation4 + $0x20] sm:$0xff] }
  0x19   :  { %366 = vmatpush.msra.mxu3 %v226_v23  ;;  %347 = vmatpush.msra.mxu2 %v209_v25  ;;  %v190_v38 = vld [vmem:[#allocation4 + $0xb0] sm:$0xff]  ;;  %v189_v42 = vld [vmem:[#allocation4 + $0xa8] sm:$0xff]  ;;  %v204_v45 = vld [vmem:[#allocation4 + $0x120] sm:$0xff] }
  0x1a   :  { %327 = vmatpush.msra.mxu1 %v193_v26  ;;  %308 = vmatpush.msra.mxu0 %v176_v28  ;;  %v222_v39 = vld [vmem:[#allocation4 + $0x1b0] sm:$0xff]  ;;  %v221_v43 = vld [vmem:[#allocation4 + $0x1a8] sm:$0xff]  ;;  %v188_v46 = vld [vmem:[#allocation4 + $0xa0] sm:$0xff] }
  0x1b   :  { %367 = vmatpush.msra.mxu3 %v225_v27  ;;  %348 = vmatpush.msra.mxu2 %v208_v29  ;;  %v220_v47 = vld [vmem:[#allocation4 + $0x1a0] sm:$0xff]  ;;  %v171_v48 = vld [vmem:[#allocation4 + $0x18] sm:$0xff]  ;;  %v170_v52 = vld [vmem:[#allocation4 + $0x10] sm:$0xff] }
  0x1c   :  { %328 = vmatpush.msra.mxu1 %v192_v30  ;;  %309 = vmatpush.msra.mxu0 %v175_v32  ;;  %v203_v49 = vld [vmem:[#allocation4 + $0x118] sm:$0xff]  ;;  %v202_v53 = vld [vmem:[#allocation4 + $0x110] sm:$0xff]  ;;  %v169_v56 = vld [vmem:[#allocation4 + $0x8] sm:$0xff] }
  0x1d   :  { %368 = vmatpush.msra.mxu3 %v224_v31  ;;  %349 = vmatpush.msra.mxu2 %v207_v33  ;;  %v187_v50 = vld [vmem:[#allocation4 + $0x98] sm:$0xff]  ;;  %v186_v54 = vld [vmem:[#allocation4 + $0x90] sm:$0xff]  ;;  %v201_v57 = vld [vmem:[#allocation4 + $0x108] sm:$0xff] }
  0x1e   :  { %329 = vmatpush.msra.mxu1 %v191_v34  ;;  %310 = vmatpush.msra.mxu0 %v174_v36  ;;  %v219_v51 = vld [vmem:[#allocation4 + $0x198] sm:$0xff]  ;;  %v218_v55 = vld [vmem:[#allocation4 + $0x190] sm:$0xff]  ;;  %v185_v58 = vld [vmem:[#allocation4 + $0x88] sm:$0xff] }
  0x1f   :  { %369 = vmatpush.msra.mxu3 %v223_v35  ;;  %350 = vmatpush.msra.mxu2 %v206_v37  ;;  %v217_v59 = vld [vmem:[#allocation4 + $0x188] sm:$0xff]  ;;  %v168_v60 = vld [vmem:[#allocation4] sm:$0xff]  ;;  %v247_v62 = vld [vmem:[#allocation4 + $0x278] sm:$0xff] }
  0x20   :  { %330 = vmatpush.msra.mxu1 %v190_v38  ;;  %311 = vmatpush.msra.mxu0 %v173_v40  ;;  %v200_v61 = vld [vmem:[#allocation4 + $0x100] sm:$0xff]  ;;  %v279_v63 = vld [vmem:[#allocation4 + $0x378] sm:$0xff]  ;;  %v246_v2 = vld [vmem:[#allocation4 + $0x270] sm:$0xff] }
  0x21   :  { %370 = vmatpush.msra.mxu3 %v222_v39  ;;  %351 = vmatpush.msra.mxu2 %v205_v41  ;;  %v184_v0 = vld [vmem:[#allocation4 + $0x80] sm:$0xff]  ;;  %v263_v3 = vld [vmem:[#allocation4 + $0x2f8] sm:$0xff]  ;;  %v278_v4 = vld [vmem:[#allocation4 + $0x370] sm:$0xff] }
  0x22   :  { %331 = vmatpush.msra.mxu1 %v189_v42  ;;  %312 = vmatpush.msra.mxu0 %v172_v44  ;;  %v216_v1 = vld [vmem:[#allocation4 + $0x180] sm:$0xff]  ;;  %v71_v5 = vld [vmem:[#allocation2 + $0x78] sm:$0xff]  ;;  %v245_v6 = vld [vmem:[#allocation4 + $0x268] sm:$0xff] }
  0x23   :  { %371 = vmatpush.msra.mxu3 %v221_v43  ;;  %352 = vmatpush.msra.mxu2 %v204_v45  ;;  %v262_v7 = vld [vmem:[#allocation4 + $0x2f0] sm:$0xff]  ;;  %v277_v8 = vld [vmem:[#allocation4 + $0x368] sm:$0xff]  ;;  %v244_v10 = vld [vmem:[#allocation4 + $0x260] sm:$0xff] }
  0x24   :  { %332 = vmatpush.msra.mxu1 %v188_v46  ;;  %313 = vmatpush.msra.mxu0 %v171_v48  ;;  %v70_v9 = vld [vmem:[#allocation2 + $0x70] sm:$0xff]  ;;  %v261_v11 = vld [vmem:[#allocation4 + $0x2e8] sm:$0xff]  ;;  %v276_v12 = vld [vmem:[#allocation4 + $0x360] sm:$0xff] }
  0x25   :  { %372 = vmatpush.msra.mxu3 %v220_v47  ;;  %353 = vmatpush.msra.mxu2 %v203_v49  ;;  %v69_v13 = vld [vmem:[#allocation2 + $0x68] sm:$0xff]  ;;  %v243_v14 = vld [vmem:[#allocation4 + $0x258] sm:$0xff]  ;;  %v260_v15 = vld [vmem:[#allocation4 + $0x2e0] sm:$0xff] }
  0x26   :  { %333 = vmatpush.msra.mxu1 %v187_v50  ;;  %314 = vmatpush.msra.mxu0 %v170_v52  ;;  %v275_v16 = vld [vmem:[#allocation4 + $0x358] sm:$0xff]  ;;  %v68_v17 = vld [vmem:[#allocation2 + $0x60] sm:$0xff]  ;;  %v242_v18 = vld [vmem:[#allocation4 + $0x250] sm:$0xff] }
  0x27   :  { %373 = vmatpush.msra.mxu3 %v219_v51  ;;  %354 = vmatpush.msra.mxu2 %v202_v53  ;;  %v259_v19 = vld [vmem:[#allocation4 + $0x2d8] sm:$0xff]  ;;  %v274_v20 = vld [vmem:[#allocation4 + $0x350] sm:$0xff]  ;;  %v241_v22 = vld [vmem:[#allocation4 + $0x248] sm:$0xff] }
  0x28   :  { %334 = vmatpush.msra.mxu1 %v186_v54  ;;  %315 = vmatpush.msra.mxu0 %v169_v56  ;;  %v67_v21 = vld [vmem:[#allocation2 + $0x58] sm:$0xff]  ;;  %v258_v23 = vld [vmem:[#allocation4 + $0x2d0] sm:$0xff]  ;;  %v273_v24 = vld [vmem:[#allocation4 + $0x348] sm:$0xff] }
  0x29   :  { %374 = vmatpush.msra.mxu3 %v218_v55  ;;  %355 = vmatpush.msra.mxu2 %v201_v57  ;;  %v66_v25 = vld [vmem:[#allocation2 + $0x50] sm:$0xff]  ;;  %v240_v26 = vld [vmem:[#allocation4 + $0x240] sm:$0xff]  ;;  %v257_v27 = vld [vmem:[#allocation4 + $0x2c8] sm:$0xff] }
  0x2a   :  { %335 = vmatpush.msra.mxu1 %v185_v58  ;;  %316 = vmatpush.msra.mxu0 %v168_v60  ;;  %v272_v28 = vld [vmem:[#allocation4 + $0x340] sm:$0xff]  ;;  %v65_v29 = vld [vmem:[#allocation2 + $0x48] sm:$0xff]  ;;  %v239_v30 = vld [vmem:[#allocation4 + $0x238] sm:$0xff] }
  0x2b   :  { %375 = vmatpush.msra.mxu3 %v217_v59  ;;  %356 = vmatpush.msra.mxu2 %v200_v61  ;;  %v256_v31 = vld [vmem:[#allocation4 + $0x2c0] sm:$0xff]  ;;  %v271_v32 = vld [vmem:[#allocation4 + $0x338] sm:$0xff]  ;;  %v238_v34 = vld [vmem:[#allocation4 + $0x230] sm:$0xff] }
  0x2c   :  { %381 = vmatpush.msrb.mxu0 %v247_v62  ;;  %336 = vmatpush.msra.mxu1 %v184_v0  ;;  %v64_v33 = vld [vmem:[#allocation2 + $0x40] sm:$0xff]  ;;  %v255_v35 = vld [vmem:[#allocation4 + $0x2b8] sm:$0xff]  ;;  %v270_v36 = vld [vmem:[#allocation4 + $0x330] sm:$0xff] }
  0x2d   :  { %421 = vmatpush.msrb.mxu2 %v279_v63  ;;  %376 = vmatpush.msra.mxu3 %v216_v1  ;;  %v63_v37 = vld [vmem:[#allocation2 + $0x38] sm:$0xff]  ;;  %v237_v38 = vld [vmem:[#allocation4 + $0x228] sm:$0xff]  ;;  %v254_v39 = vld [vmem:[#allocation4 + $0x2b0] sm:$0xff] }
  0x2e   :  { %382 = vmatpush.msrb.mxu0 %v246_v2  ;;  %401 = vmatpush.msrb.mxu1 %v263_v3  ;;  %v739_v40 = vld [vmem:[%s836_s0 + $0x10] sm:$0xff]  ;;  %v269_v41 = vld [vmem:[#allocation4 + $0x328] sm:$0xff]  ;;  %v236_v43 = vld [vmem:[#allocation4 + $0x220] sm:$0xff] }
  0x2f   :  { %422 = vmatpush.msrb.mxu2 %v278_v4  ;;  %441 = vmatpush.msrb.mxu3 %v71_v5  ;;  %v62_v42 = vld [vmem:[#allocation2 + $0x30] sm:$0xff]  ;;  %v253_v44 = vld [vmem:[#allocation4 + $0x2a8] sm:$0xff]  ;;  %v744_v45 = vld [vmem:[%s836_s0] sm:$0xff]  ;;  %v289_v48 = vsub.f32 0.0, %v739_v40 }
  0x30   :  { %383 = vmatpush.msrb.mxu0 %v245_v6  ;;  %402 = vmatpush.msrb.mxu1 %v262_v7  ;;  %v268_v46 = vld [vmem:[#allocation4 + $0x320] sm:$0xff]  ;;  %v61_v47 = vld [vmem:[#allocation2 + $0x28] sm:$0xff]  ;;  %v750_v49 = vld [vmem:[%s836_s0 + $0x18] sm:$0xff]  ;;  %v287_v54 = vsub.f32 0.0, %v744_v45 }
  0x31   :  { %423 = vmatpush.msrb.mxu2 %v277_v8  ;;  %442 = vmatpush.msrb.mxu3 %v70_v9  ;;  %v235_v50 = vld [vmem:[#allocation4 + $0x218] sm:$0xff]  ;;  %v252_v51 = vld [vmem:[#allocation4 + $0x2a0] sm:$0xff]  ;;  %v756_v55 = vld [vmem:[%s836_s0 + $0x8] sm:$0xff]  ;;  %v290_v58 = vsub.f32 0.0, %v750_v49  ;;  %v296_v61 = vmax.f32 %v289_v48, 0.0 }
  0x32   :  { %384 = vmatpush.msrb.mxu0 %v244_v10  ;;  %403 = vmatpush.msrb.mxu1 %v261_v11  ;;  %v267_v52 = vld [vmem:[#allocation4 + $0x318] sm:$0xff]  ;;  %v60_v53 = vld [vmem:[#allocation2 + $0x20] sm:$0xff]  ;;  %v234_v56 = vld [vmem:[#allocation4 + $0x210] sm:$0xff]  ;;  %v288_v63 = vsub.f32 0.0, %v756_v55  ;;  %v294_v2 = vmax.f32 %v287_v54, 0.0 }
  0x33   :  { %424 = vmatpush.msrb.mxu2 %v276_v12  ;;  %443 = vmatpush.msrb.mxu3 %v69_v13  ;;  %v251_v57 = vld [vmem:[#allocation4 + $0x298] sm:$0xff]  ;;  %v266_v59 = vld [vmem:[#allocation4 + $0x310] sm:$0xff]  ;;  %v233_v62 = vld [vmem:[#allocation4 + $0x208] sm:$0xff]  ;;  %v297_v4 = vmax.f32 %v290_v58, 0.0 }
  0x34   :  { %385 = vmatpush.msrb.mxu0 %v243_v14  ;;  %404 = vmatpush.msrb.mxu1 %v260_v15  ;;  %v59_v60 = vld [vmem:[#allocation2 + $0x18] sm:$0xff]  ;;  %v250_v0 = vld [vmem:[#allocation4 + $0x290] sm:$0xff]  ;;  %v265_v1 = vld [vmem:[#allocation4 + $0x308] sm:$0xff]  ;;  %v295_v9 = vmax.f32 %v288_v63, 0.0 }
  0x35   :  { %425 = vmatpush.msrb.mxu2 %v275_v16  ;;  %444 = vmatpush.msrb.mxu3 %v68_v17  ;;  %v58_v3 = vld [vmem:[#allocation2 + $0x10] sm:$0xff]  ;;  %v232_v6 = vld [vmem:[#allocation4 + $0x200] sm:$0xff]  ;;  %v249_v7 = vld [vmem:[#allocation4 + $0x288] sm:$0xff] }
  0x36   :  { %386 = vmatpush.msrb.mxu0 %v242_v18  ;;  %405 = vmatpush.msrb.mxu1 %v259_v19  ;;  %v763_v5 = vld [vmem:[%s836_s0 + $0x30] sm:$0xff]  ;;  %v264_v8 = vld [vmem:[#allocation4 + $0x300] sm:$0xff]  ;;  %v57_v11 = vld [vmem:[#allocation2 + $0x8] sm:$0xff] }
  0x37   :  { %426 = vmatpush.msrb.mxu2 %v274_v20  ;;  %445 = vmatpush.msrb.mxu3 %v67_v21  ;;  %v768_v10 = vld [vmem:[%s836_s0 + $0x20] sm:$0xff]  ;;  %v293_v12 = vsub.f32 0.0, %v763_v5  ;;  %v87_v13 = vld [vmem:[#allocation2 + $0xf8] sm:$0xff]  ;;  %v775_v18 = vld [vmem:[%s836_s0 + $0x28] sm:$0xff] }
  0x38   :  { %387 = vmatpush.msrb.mxu0 %v241_v22  ;;  %406 = vmatpush.msrb.mxu1 %v258_v23  ;;  %v119_v14 = vld [vmem:[#allocation2 + $0x1f8] sm:$0xff]  ;;  %v248_v15 = vld [vmem:[#allocation4 + $0x280] sm:$0xff]  ;;  %v291_v17 = vsub.f32 0.0, %v768_v10  ;;  %v86_v19 = vld [vmem:[#allocation2 + $0xf0] sm:$0xff] }
  0x39   :  { %427 = vmatpush.msrb.mxu2 %v273_v24  ;;  %446 = vmatpush.msrb.mxu3 %v66_v25  ;;  %v56_v16 = vld [vmem:[#allocation2] sm:$0xff]  ;;  %v103_v20 = vld [vmem:[#allocation2 + $0x178] sm:$0xff]  ;;  %v118_v21 = vld [vmem:[#allocation2 + $0x1f0] sm:$0xff]  ;;  %v300_v23 = vmax.f32 %v293_v12, 0.0  ;;  %v292_v25 = vsub.f32 0.0, %v775_v18 }
  0x3a   :  { %388 = vmatpush.msrb.mxu0 %v240_v26  ;;  %407 = vmatpush.msrb.mxu1 %v257_v27  ;;  %v135_v22 = vld [vmem:[#allocation2 + $0x278] sm:$0xff]  ;;  %v85_v24 = vld [vmem:[#allocation2 + $0xe8] sm:$0xff]  ;;  %v102_v26 = vld [vmem:[#allocation2 + $0x170] sm:$0xff] }
  0x3b   :  { %428 = vmatpush.msrb.mxu2 %v272_v28  ;;  %447 = vmatpush.msrb.mxu3 %v65_v29  ;;  %v117_v27 = vld [vmem:[#allocation2 + $0x1e8] sm:$0xff]  ;;  %v298_v28 = vmax.f32 %v291_v17, 0.0  ;;  %v134_v29 = vld [vmem:[#allocation2 + $0x270] sm:$0xff]  ;;  %v79_v54 = vld [vmem:[#allocation2 + $0xb8] sm:$0xff] }
  0x3c   :  { %389 = vmatpush.msrb.mxu0 %v239_v30  ;;  %408 = vmatpush.msrb.mxu1 %v256_v31  ;;  %v280_v30 = vmax.f32 %v744_v45, 0.0  ;;  %v84_v31 = vld [vmem:[#allocation2 + $0xe0] sm:$0xff]  ;;  %v81_v45 = vld [vmem:[#allocation2 + $0xc8] sm:$0xff]  ;;  %v130_v48 = vld [vmem:[#allocation2 + $0x250] sm:$0xff] }
  0x3d   :  { %429 = vmatpush.msrb.mxu2 %v271_v32  ;;  %448 = vmatpush.msrb.mxu3 %v64_v33  ;;  %v101_v32 = vld [vmem:[#allocation2 + $0x168] sm:$0xff]  ;;  %v116_v33 = vld [vmem:[#allocation2 + $0x1e0] sm:$0xff] }
  0x3e   :  { %390 = vmatpush.msrb.mxu0 %v238_v34  ;;  %409 = vmatpush.msrb.mxu1 %v255_v35  ;;  %v299_v34 = vmax.f32 %v292_v25, 0.0  ;;  %v133_v35 = vld [vmem:[#allocation2 + $0x268] sm:$0xff]  ;;  %v128_v58 = vld [vmem:[#allocation2 + $0x240] sm:$0xff]  ;;  %v281_v25 = vmax.f32 %v756_v55, 0.0  ;;  %v167_v55 = vld [vmem:[#allocation2 + $0x378] sm:$0xff] }
  0x3f   :  { %430 = vmatpush.msrb.mxu2 %v270_v36  ;;  %449 = vmatpush.msrb.mxu3 %v63_v37  ;;  %v83_v36 = vld [vmem:[#allocation2 + $0xd8] sm:$0xff]  ;;  %v100_v37 = vld [vmem:[#allocation2 + $0x160] sm:$0xff]  ;;  %v77_v63 = vld [vmem:[#allocation2 + $0xa8] sm:$0xff] }
  0x40   :  { %391 = vmatpush.msrb.mxu0 %v237_v38  ;;  %410 = vmatpush.msrb.mxu1 %v254_v39  ;;  %v115_v38 = vld [vmem:[#allocation2 + $0x1d8] sm:$0xff]  ;;  %v132_v39 = vld [vmem:[#allocation2 + $0x260] sm:$0xff]  ;;  %v73_v17 = vld [vmem:[#allocation2 + $0x88] sm:$0xff] }
  0x41   :  { %431 = vmatpush.msrb.mxu2 %v269_v41  ;;  %450 = vmatpush.msrb.mxu3 %v62_v42  ;;  %v82_v41 = vld [vmem:[#allocation2 + $0xd0] sm:$0xff]  ;;  %v99_v42 = vld [vmem:[#allocation2 + $0x158] sm:$0xff]  ;;  %v124_v12 = vld [vmem:[#allocation2 + $0x220] sm:$0xff] }
  0x42   :  { %392 = vmatpush.msrb.mxu0 %v236_v43  ;;  %411 = vmatpush.msrb.mxu1 %v253_v44  ;;  %v114_v43 = vld [vmem:[#allocation2 + $0x1d0] sm:$0xff]  ;;  %v131_v44 = vld [vmem:[#allocation2 + $0x258] sm:$0xff] }
  0x43   :  { %432 = vmatpush.msrb.mxu2 %v268_v46  ;;  %451 = vmatpush.msrb.mxu3 %v61_v47  ;;  %v98_v46 = vld [vmem:[#allocation2 + $0x150] sm:$0xff]  ;;  %v113_v47 = vld [vmem:[#allocation2 + $0x1c8] sm:$0xff] }
  0x44   :  { %393 = vmatpush.msrb.mxu0 %v235_v50  ;;  %412 = vmatpush.msrb.mxu1 %v252_v51  ;;  %v80_v50 = vld [vmem:[#allocation2 + $0xc0] sm:$0xff]  ;;  %v97_v51 = vld [vmem:[#allocation2 + $0x148] sm:$0xff] }
  0x45   :  { %433 = vmatpush.msrb.mxu2 %v267_v52  ;;  %452 = vmatpush.msrb.mxu3 %v60_v53  ;;  %v112_v52 = vld [vmem:[#allocation2 + $0x1c0] sm:$0xff]  ;;  %v129_v53 = vld [vmem:[#allocation2 + $0x248] sm:$0xff] }
  0x46   :  { %394 = vmatpush.msrb.mxu0 %v234_v56  ;;  %413 = vmatpush.msrb.mxu1 %v251_v57  ;;  %v96_v56 = vld [vmem:[#allocation2 + $0x140] sm:$0xff]  ;;  %v111_v57 = vld [vmem:[#allocation2 + $0x1b8] sm:$0xff] }
  0x47   :  { %434 = vmatpush.msrb.mxu2 %v266_v59  ;;  %453 = vmatpush.msrb.mxu3 %v59_v60  ;;  %v78_v59 = vld [vmem:[#allocation2 + $0xb0] sm:$0xff]  ;;  %v95_v60 = vld [vmem:[#allocation2 + $0x138] sm:$0xff] }
  0x48   :  { %357 = vmatmul.f32.vlgmr.msra.gmra.mxu2 %v296_v61  ;;  %395 = vmatpush.msrb.mxu0 %v233_v62  ;;  %v110_v61 = vld [vmem:[#allocation2 + $0x1b0] sm:$0xff]  ;;  %v127_v62 = vld [vmem:[#allocation2 + $0x238] sm:$0xff] }
  0x49   :  { %414 = vmatpush.msrb.mxu1 %v250_v0  ;;  %435 = vmatpush.msrb.mxu2 %v265_v1  ;;  %v94_v0 = vld [vmem:[#allocation2 + $0x130] sm:$0xff]  ;;  %v109_v1 = vld [vmem:[#allocation2 + $0x1a8] sm:$0xff] }
  0x4a   :  { %454 = vmatpush.msrb.mxu3 %v58_v3  ;;  %317 = vmatmul.f32.vlgmr.msra.gmra.mxu0 %v294_v2  ;;  %v126_v2 = vld [vmem:[#allocation2 + $0x230] sm:$0xff]  ;;  %v76_v3 = vld [vmem:[#allocation2 + $0xa0] sm:$0xff] }
  0x4b   :  { %377 = vmatmul.f32.vlgmr.msra.gmra.mxu3 %v297_v4  ;;  %396 = vmatpush.msrb.mxu0 %v232_v6  ;;  %v93_v4 = vld [vmem:[#allocation2 + $0x128] sm:$0xff]  ;;  %v108_v6 = vld [vmem:[#allocation2 + $0x1a0] sm:$0xff] }
  0x4c   :  { %415 = vmatpush.msrb.mxu1 %v249_v7  ;;  %436 = vmatpush.msrb.mxu2 %v264_v8  ;;  %v125_v7 = vld [vmem:[#allocation2 + $0x228] sm:$0xff]  ;;  %v75_v8 = vld [vmem:[#allocation2 + $0x98] sm:$0xff] }
  0x4d   :  { %455 = vmatpush.msrb.mxu3 %v57_v11  ;;  %337 = vmatmul.f32.vlgmr.msra.gmra.mxu1 %v295_v9  ;;  %v92_v9 = vld [vmem:[#allocation2 + $0x120] sm:$0xff]  ;;  %v107_v11 = vld [vmem:[#allocation2 + $0x198] sm:$0xff] }
  0x4e   :  { %461 = vmatpush.msra.mxu0 %v87_v13  ;;  %501 = vmatpush.msra.mxu2 %v119_v14  ;;  %v74_v13 = vld [vmem:[#allocation2 + $0x90] sm:$0xff]  ;;  %v91_v14 = vld [vmem:[#allocation2 + $0x118] sm:$0xff] }
  0x4f   :  { %416 = vmatpush.msrb.mxu1 %v248_v15  ;;  %456 = vmatpush.msrb.mxu3 %v56_v16  ;;  %v106_v15 = vld [vmem:[#allocation2 + $0x190] sm:$0xff]  ;;  %v123_v16 = vld [vmem:[#allocation2 + $0x218] sm:$0xff] }
  0x50   :  { %462 = vmatpush.msra.mxu0 %v86_v19  ;;  %502 = vmatpush.msra.mxu2 %v118_v21  ;;  %v90_v19 = vld [vmem:[#allocation2 + $0x110] sm:$0xff] }
  0x51   :  { %481 = vmatpush.msra.mxu1 %v103_v20  ;;  %521 = vmatpush.msra.mxu3 %v135_v22  ;;  %v105_v20 = vld [vmem:[#allocation2 + $0x188] sm:$0xff]  ;;  %v122_v21 = vld [vmem:[#allocation2 + $0x210] sm:$0xff]  ;;  %v72_v22 = vld [vmem:[#allocation2 + $0x80] sm:$0xff] }
  0x52   :  { %437 = vmatmul.f32.vlgmr.msrb.gmra.mxu2 %v300_v23  ;;  %463 = vmatpush.msra.mxu0 %v85_v24  ;;  %v89_v23 = vld [vmem:[#allocation2 + $0x108] sm:$0xff]  ;;  %v283_v24 = vmax.f32 %v750_v49, 0.0  ;;  %v150_v49 = vld [vmem:[#allocation2 + $0x2f0] sm:$0xff] }
  0x53   :  { %482 = vmatpush.msra.mxu1 %v102_v26  ;;  %503 = vmatpush.msra.mxu2 %v117_v27  ;;  %v104_v26 = vld [vmem:[#allocation2 + $0x180] sm:$0xff]  ;;  %v121_v27 = vld [vmem:[#allocation2 + $0x208] sm:$0xff] }
  0x54   :  { %522 = vmatpush.msra.mxu3 %v134_v29  ;;  %397 = vmatmul.f32.vlgmr.msrb.gmra.mxu0 %v298_v28  ;;  %v282_v28 = vmax.f32 %v739_v40, 0.0  ;;  %v151_v29 = vld [vmem:[#allocation2 + $0x2f8] sm:$0xff]  ;;  %v166_v40 = vld [vmem:[#allocation2 + $0x370] sm:$0xff] }
  0x55   :  { %457 = vmatmul.f32.vlgmr.msrb.gmra.mxu3 %v280_v30  ;;  %464 = vmatpush.msra.mxu0 %v84_v31  ;;  %v88_v30 = vld [vmem:[#allocation2 + $0x100] sm:$0xff]  ;;  %v284_v31 = vmax.f32 %v768_v10, 0.0  ;;  %v147_v10 = vld [vmem:[#allocation2 + $0x2d8] sm:$0xff] }
  0x56   :  { %483 = vmatpush.msra.mxu1 %v101_v32  ;;  %504 = vmatpush.msra.mxu2 %v116_v33  ;;  %v120_v32 = vld [vmem:[#allocation2 + $0x200] sm:$0xff]  ;;  %v149_v33 = vld [vmem:[#allocation2 + $0x2e8] sm:$0xff] }
  0x57   :  { %523 = vmatpush.msra.mxu3 %v133_v35  ;;  %417 = vmatmul.f32.vlgmr.msrb.gmra.mxu1 %v299_v34  ;;  %v148_v34 = vld [vmem:[#allocation2 + $0x2e0] sm:$0xff]  ;;  %v165_v35 = vld [vmem:[#allocation2 + $0x368] sm:$0xff] }
  0x58   :  { %465 = vmatpush.msra.mxu0 %v83_v36  ;;  %484 = vmatpush.msra.mxu1 %v100_v37  ;;  %v164_v36 = vld [vmem:[#allocation2 + $0x360] sm:$0xff]  ;;  %v146_v37 = vld [vmem:[#allocation2 + $0x2d0] sm:$0xff] }
  0x59   :  { %505 = vmatpush.msra.mxu2 %v115_v38  ;;  %524 = vmatpush.msra.mxu3 %v132_v39  ;;  %v163_v38 = vld [vmem:[#allocation2 + $0x358] sm:$0xff]  ;;  %v145_v39 = vld [vmem:[#allocation2 + $0x2c8] sm:$0xff] }
  0x5a   :  { %466 = vmatpush.msra.mxu0 %v82_v41  ;;  %485 = vmatpush.msra.mxu1 %v99_v42  ;;  %v162_v41 = vld [vmem:[#allocation2 + $0x350] sm:$0xff]  ;;  %v144_v42 = vld [vmem:[#allocation2 + $0x2c0] sm:$0xff] }
  0x5b   :  { %506 = vmatpush.msra.mxu2 %v114_v43  ;;  %525 = vmatpush.msra.mxu3 %v131_v44  ;;  %v161_v43 = vld [vmem:[#allocation2 + $0x348] sm:$0xff]  ;;  %v143_v44 = vld [vmem:[#allocation2 + $0x2b8] sm:$0xff] }
  0x5c   :  { %467 = vmatpush.msra.mxu0 %v81_v45  ;;  %486 = vmatpush.msra.mxu1 %v98_v46  ;;  %v160_v45 = vld [vmem:[#allocation2 + $0x340] sm:$0xff]  ;;  %v142_v46 = vld [vmem:[#allocation2 + $0x2b0] sm:$0xff] }
  0x5d   :  { %507 = vmatpush.msra.mxu2 %v113_v47  ;;  %526 = vmatpush.msra.mxu3 %v130_v48  ;;  %v159_v47 = vld [vmem:[#allocation2 + $0x338] sm:$0xff]  ;;  %v141_v48 = vld [vmem:[#allocation2 + $0x2a8] sm:$0xff] }
  0x5e   :  { %468 = vmatpush.msra.mxu0 %v80_v50  ;;  %487 = vmatpush.msra.mxu1 %v97_v51  ;;  %v158_v50 = vld [vmem:[#allocation2 + $0x330] sm:$0xff]  ;;  %v140_v51 = vld [vmem:[#allocation2 + $0x2a0] sm:$0xff] }
  0x5f   :  { %508 = vmatpush.msra.mxu2 %v112_v52  ;;  %527 = vmatpush.msra.mxu3 %v129_v53  ;;  %v157_v52 = vld [vmem:[#allocation2 + $0x328] sm:$0xff]  ;;  %v139_v53 = vld [vmem:[#allocation2 + $0x298] sm:$0xff] }
  0x60   :  { %469 = vmatpush.msra.mxu0 %v79_v54  ;;  %488 = vmatpush.msra.mxu1 %v96_v56  ;;  %v156_v54 = vld [vmem:[#allocation2 + $0x320] sm:$0xff]  ;;  %v138_v56 = vld [vmem:[#allocation2 + $0x290] sm:$0xff] }
  0x61   :  { %509 = vmatpush.msra.mxu2 %v111_v57  ;;  %528 = vmatpush.msra.mxu3 %v128_v58  ;;  %v155_v57 = vld [vmem:[#allocation2 + $0x318] sm:$0xff]  ;;  %v137_v58 = vld [vmem:[#allocation2 + $0x288] sm:$0xff] }
  0x62   :  { %470 = vmatpush.msra.mxu0 %v78_v59  ;;  %489 = vmatpush.msra.mxu1 %v95_v60  ;;  %v154_v59 = vld [vmem:[#allocation2 + $0x310] sm:$0xff]  ;;  %v285_v60 = vmax.f32 %v775_v18, 0.0 }
  0x63   :  { %510 = vmatpush.msra.mxu2 %v110_v61  ;;  %529 = vmatpush.msra.mxu3 %v127_v62  ;;  %v136_v61 = vld [vmem:[#allocation2 + $0x280] sm:$0xff]  ;;  %v153_v62 = vld [vmem:[#allocation2 + $0x308] sm:$0xff]  ;;  %v596_v18 = vld [vmem:[%s839_s3 + $0x70] sm:$0xff] }
  0x64   :  { %471 = vmatpush.msra.mxu0 %v77_v63  ;;  %490 = vmatpush.msra.mxu1 %v94_v0  ;;  %v286_v63 = vmax.f32 %v763_v5, 0.0  ;;  %v152_v0 = vld [vmem:[#allocation2 + $0x300] sm:$0xff] }
  0x65   :  { %511 = vmatpush.msra.mxu2 %v109_v1  ;;  %530 = vmatpush.msra.mxu3 %v126_v2  ;;  %v597_v1 = vld [vmem:[%s839_s3 + $0x78] sm:$0xff]  ;;  %v595_v2 = vld [vmem:[%s839_s3 + $0x68] sm:$0xff]  ;;  %v594_v5 = vld [vmem:[%s839_s3 + $0x60] sm:$0xff] }
  0x66   :  { %472 = vmatpush.msra.mxu0 %v76_v3  ;;  %491 = vmatpush.msra.mxu1 %v93_v4  ;;  %v593_v3 = vld [vmem:[%s839_s3 + $0x58] sm:$0xff]  ;;  %v592_v4 = vld [vmem:[%s839_s3 + $0x50] sm:$0xff] }
  0x67   :  { %512 = vmatpush.msra.mxu2 %v108_v6  ;;  %531 = vmatpush.msra.mxu3 %v125_v7  ;;  %v591_v6 = vld [vmem:[%s839_s3 + $0x48] sm:$0xff]  ;;  %v590_v7 = vld [vmem:[%s839_s3 + $0x40] sm:$0xff] }
  0x68   :  { %473 = vmatpush.msra.mxu0 %v75_v8  ;;  %492 = vmatpush.msra.mxu1 %v92_v9  ;;  %v589_v8 = vld [vmem:[%s839_s3 + $0x38] sm:$0xff] }
  0x69   :  { %513 = vmatpush.msra.mxu2 %v107_v11  ;;  %532 = vmatpush.msra.mxu3 %v124_v12  ;;  %v588_v11 = vld [vmem:[%s839_s3 + $0x30] sm:$0xff] }
  0x6a   :  { %474 = vmatpush.msra.mxu0 %v74_v13  ;;  %493 = vmatpush.msra.mxu1 %v91_v14  ;;  %v587_v13 = vld [vmem:[%s839_s3 + $0x28] sm:$0xff] }
  0x6b   :  { %514 = vmatpush.msra.mxu2 %v106_v15  ;;  %533 = vmatpush.msra.mxu3 %v123_v16  ;;  %v586_v16 = vld [vmem:[%s839_s3 + $0x20] sm:$0xff] }
  0x6c   :  { %475 = vmatpush.msra.mxu0 %v73_v17  ;;  %494 = vmatpush.msra.mxu1 %v90_v19 }
  0x6d   :  { %515 = vmatpush.msra.mxu2 %v105_v20  ;;  %534 = vmatpush.msra.mxu3 %v122_v21  ;;  %v585_v20 = vld [vmem:[%s839_s3 + $0x18] sm:$0xff]  ;;  %v584_v21 = vld [vmem:[%s839_s3 + $0x10] sm:$0xff] }
  0x6e   :  { %476 = vmatpush.msra.mxu0 %v72_v22  ;;  %495 = vmatpush.msra.mxu1 %v89_v23 }
  0x6f   :  { %516 = vmatpush.msra.mxu2 %v104_v26  ;;  %535 = vmatpush.msra.mxu3 %v121_v27 }
  0x70   :  { %477 = vmatmul.f32.vlgmr.msra.gmra.mxu0 %v281_v25  ;;  %517 = vmatmul.f32.vlgmr.msra.gmra.mxu2 %v283_v24  ;;  %v583_v24 = vld [vmem:[%s839_s3 + $0x8] sm:$0xff]  ;;  %v582_v25 = vld [vmem:[%s839_s3] sm:$0xff] }
  0x71   :  { %541 = vmatpush.msrb.mxu0 %v151_v29  ;;  %496 = vmatpush.msra.mxu1 %v88_v30 }
  0x72   :  { %536 = vmatpush.msra.mxu3 %v120_v32  ;;  %497 = vmatmul.f32.vlgmr.msra.gmra.mxu1 %v282_v28 }
  0x73   :  { %537 = vmatmul.f32.vlgmr.msra.gmra.mxu3 %v284_v31  ;;  %542 = vmatpush.msrb.mxu0 %v150_v49 }
  0x74   :  { %561 = vmatpush.msrb.mxu1 %v167_v55  ;;  %598 = vmatpush.msrb.mxu2 %v597_v1 }
  0x75   :  { %543 = vmatpush.msrb.mxu0 %v149_v33 }
  0x76   :  { %562 = vmatpush.msrb.mxu1 %v166_v40  ;;  %599 = vmatpush.msrb.mxu2 %v596_v18 }
  0x77   :  { %544 = vmatpush.msrb.mxu0 %v148_v34 }
  0x78   :  { %563 = vmatpush.msrb.mxu1 %v165_v35  ;;  %600 = vmatpush.msrb.mxu2 %v595_v2 }
  0x79   :  { %545 = vmatpush.msrb.mxu0 %v147_v10 }
  0x7a   :  { %564 = vmatpush.msrb.mxu1 %v164_v36  ;;  %601 = vmatpush.msrb.mxu2 %v594_v5 }
  0x7b   :  { %546 = vmatpush.msrb.mxu0 %v146_v37 }
  0x7c   :  { %565 = vmatpush.msrb.mxu1 %v163_v38  ;;  %602 = vmatpush.msrb.mxu2 %v593_v3 }
  0x7d   :  { %547 = vmatpush.msrb.mxu0 %v145_v39 }
  0x7e   :  { %566 = vmatpush.msrb.mxu1 %v162_v41  ;;  %603 = vmatpush.msrb.mxu2 %v592_v4 }
  0x7f   :  { %548 = vmatpush.msrb.mxu0 %v144_v42 }
  0x80   :  { %567 = vmatpush.msrb.mxu1 %v161_v43  ;;  %604 = vmatpush.msrb.mxu2 %v591_v6  ;;  %v619_v43 = vlaneseq }
  0x81   :  { %549 = vmatpush.msrb.mxu0 %v143_v44 }
  0x82   :  { %568 = vmatpush.msrb.mxu1 %v160_v45  ;;  %605 = vmatpush.msrb.mxu2 %v590_v7  ;;  %v620_v44 = vand.u32 127, %v619_v43 }
  0x83   :  { %550 = vmatpush.msrb.mxu0 %v142_v46 }
  0x84   :  { %569 = vmatpush.msrb.mxu1 %v159_v47  ;;  %606 = vmatpush.msrb.mxu2 %v589_v8  ;;  %vm621_vm0 = vcmp.lt.s32.totalorder %v620_v44, 10 }
  0x85   :  { %551 = vmatpush.msrb.mxu0 %v141_v48 }
  0x86   :  { %570 = vmatpush.msrb.mxu1 %v158_v50  ;;  %607 = vmatpush.msrb.mxu2 %v588_v11 }
  0x87   :  { %552 = vmatpush.msrb.mxu0 %v140_v51 }
  0x88   :  { %571 = vmatpush.msrb.mxu1 %v157_v52  ;;  %608 = vmatpush.msrb.mxu2 %v587_v13 }
  0x89   :  { %553 = vmatpush.msrb.mxu0 %v139_v53 }
  0x8a   :  { %572 = vmatpush.msrb.mxu1 %v156_v54  ;;  %609 = vmatpush.msrb.mxu2 %v586_v16 }
  0x8b   :  { %554 = vmatpush.msrb.mxu0 %v138_v56 }
  0x8c   :  { %573 = vmatpush.msrb.mxu1 %v155_v57  ;;  %610 = vmatpush.msrb.mxu2 %v585_v20 }
  0x8d   :  { %555 = vmatpush.msrb.mxu0 %v137_v58 }
  0x8e   :  { %574 = vmatpush.msrb.mxu1 %v154_v59  ;;  %611 = vmatpush.msrb.mxu2 %v584_v21 }
  0x8f   :  { %556 = vmatpush.msrb.mxu0 %v136_v61 }
  0x90   :  { %575 = vmatpush.msrb.mxu1 %v153_v62  ;;  %557 = vmatmul.f32.vlgmr.msrb.gmra.mxu0 %v285_v60 }
  0x91   :  { %612 = vmatpush.msrb.mxu2 %v583_v24 }
  0x92   :  { %576 = vmatpush.msrb.mxu1 %v152_v0 }
  0x93   :  { %577 = vmatmul.f32.vlgmr.msrb.gmra.mxu1 %v286_v63  ;;  %613 = vmatpush.msrb.mxu2 %v582_v25 }
  0xc7   :  { %v318_v12 = vpop.f32.mrf.mxu0 }
  0xca   :  { %v338_v9 = vpop.f32.mrf.mxu1 }
  0xcb   :  { %v339_v14 = vadd.f32 %v338_v9, %v318_v12  ;;  %v358_v15 = vpop.f32.mrf.mxu2 }
  0xcd   :  { %v359_v17 = vadd.f32 %v358_v15, %v339_v14 }
  0xce   :  { %v378_v19 = vpop.f32.mrf.mxu3 }
  0xcf   :  { %v379_v22 = vadd.f32 %v378_v19, %v359_v17 }
  0xd1   :  { %v398_v23 = vpop.f32.mrf.mxu0 }
  0xd2   :  { %v399_v26 = vadd.f32 %v398_v23, %v379_v22 }
  0xd4   :  { %v418_v27 = vpop.f32.mrf.mxu1 }
  0xd5   :  { %v419_v28 = vadd.f32 %v418_v27, %v399_v26  ;;  %v438_v29 = vpop.f32.mrf.mxu2 }
  0xd7   :  { %v439_v30 = vadd.f32 %v438_v29, %v419_v28 }
  0xd8   :  { %v458_v31 = vpop.f32.mrf.mxu3 }
  0xd9   :  { %v459_v49 = vadd.f32 %v458_v31, %v439_v30 }
  0xed   :  { %v478_v32 = vpop.f32.mrf.mxu0 }
  0xee   :  { %v479_v55 = vadd.f32 %v478_v32, %v459_v49 }
  0xef   :  { %v498_v33 = vpop.f32.mrf.mxu1 }
  0xf0   :  { %v499_v34 = vadd.f32 %v498_v33, %v479_v55 }
  0xf3   :  { %v518_v40 = vpop.f32.mrf.mxu2 }
  0xf4   :  { %v519_v35 = vadd.f32 %v518_v40, %v499_v34 }
  0xf6   :  { %v538_v10 = vpop.f32.mrf.mxu3 }
  0xf7   :  { %v539_v36 = vadd.f32 %v538_v10, %v519_v35 }
 0x10d   :  { %v558_v37 = vpop.f32.mrf.mxu0 }
 0x10e   :  { %v559_v38 = vadd.f32 %v558_v37, %v539_v36 }
 0x110   :  { %v578_v39 = vpop.f32.mrf.mxu1 }
 0x111   :  { %v579_v41 = vadd.f32 %v578_v39, %v559_v38 }
 0x113   :  { %v581_v42 = vmax.f32 %v579_v41, 0.0 }
 0x115   :  { %614 = vmatmul.f32.vlgmr.msrb.gmra.mxu2 %v581_v42 }
 0x198   :  { %v615_v45 = vpop.f32.mrf.mxu2 }
 0x199   :  { %v618_v46 = vmax.f32 %v615_v45, 0.0 }
 0x19b   :  { %v622_v47 = vsel %vm621_vm0, %v618_v46, -inf }
 0x19c   :  { %623 = vmax.xlane.f32.xlu0 %v622_v47 }
 0x20f   :  { %v624_v48 = vpop.xlane.xlu0 %623 }
 0x210   :  { %v625_v50 = vsub.f32 %v622_v47, %v624_v48  ;;  %v632_v56 = vsub.f32 %v618_v46, %v624_v48 }
 0x212   :  { %v626_v51 = vmul.f32 1.442695, %v625_v50 }
 0x214   :  { %645 = vpow2.f32 %v626_v51 }
 0x21a   :  { %v646_v52 = vpop.eup %645 }
 0x21b   :  { %628 = vadd.xlane.f32.xlu0 %v646_v52 }
 0x28e   :  { %v629_v53 = vpop.xlane.xlu0 %628 }
 0x28f   :  { %647 = vlog2.f32 %v629_v53 }
 0x295   :  { %v648_v54 = vpop.eup %647 }
 0x296   :  { %v631_v57 = vmul.f32 0.6931472, %v648_v54 }
 0x298   :  { %v633_v58 = vsub.f32 %v632_v56, %v631_v57 }
 0x29a   :  { %634 = vst [vmem:[%s840_s4] sm:$0xff] %v633_v58 }
 0x29b   :  { %639 = vsyncpa [#allocation3], 1 }
 0x29c   :  { %640 = vsyncpa [#allocation5], 1 }

</bundles_post_ra>
